<compile_context>
chip_gen: v7x
topology: tpu7x:2x2x1
jax: 0.10.0
libtpu: 0.0.40
codegen_flags: <defaults>
</compile_context>

<pallas_src>
import functools

import jax
import jax.numpy as jnp
from jax.experimental import pallas as pl
from jax.experimental.pallas import tpu as pltpu


def _round_up(a, b):
    return ((a + b - 1) // b) * b


def _min_value(dtype):
    if jnp.issubdtype(dtype, jnp.floating):
        return jnp.array(-jnp.inf, dtype)
    return jnp.array(jnp.iinfo(dtype).min, dtype)


def _maxavg_kernel(x_ref, out_ref, *, hw_true):
    # x_ref: (tm, hw_pad) tile in VMEM; reduce over the lane (spatial) axis.
    x = x_ref[...]
    hw_pad = x.shape[-1]

    if hw_pad != hw_true:
        # Spatial axis was zero-padded to a lane-dense width; mask the max path.
        lane = jax.lax.broadcasted_iota(jnp.int32, x.shape, x.ndim - 1)
        x_for_max = jnp.where(lane < hw_true, x, _min_value(x.dtype))
    else:
        x_for_max = x

    # Max in the native dtype (exact); sum accumulated in f32 for accuracy.
    mx = jnp.max(x_for_max, axis=-1, keepdims=True).astype(out_ref.dtype)
    s = jnp.sum(x, axis=-1, keepdims=True, dtype=jnp.float32)
    av = (s * (1.0 / hw_true)).astype(out_ref.dtype)

    # Single lane-packed store: col 0 = max, col 1 = mean.
    out_ref[...] = jnp.concatenate([mx, av], axis=-1)


def max_avg_pool2d(x):
    """x: (N, C, H, W) -> (N, 2*C, 1, 1): concat([maxpool(x), avgpool(x)], axis=1)."""
    N, C, H, W = x.shape
    NC, HW = N * C, H * W
    x2d = x.reshape(NC, HW)
    itemsize = jnp.dtype(x.dtype).itemsize

    # Lane-dense spatial width (pad with zeros only if needed).
    hw_pad = _round_up(HW, 128)

    # Row-tile selection:
    #  - keep the double-buffered input tile under ~16 MiB (fits v5e's default
    #    scoped VMEM, v6e's 32 MiB scoped, and v7x's 64 MiB physical),
    #  - keep the grid length >= ~4 when there is enough work so v7x's two
    #    TensorCores both stream data and the pipeline has something to hide.
    vmem_input_budget = 16 * 1024 * 1024
    max_tm = max(8, (vmem_input_budget // (2 * hw_pad * itemsize)) // 8 * 8)
    nc8 = _round_up(NC, 8)
    tm_grid = _round_up(max(pl.cdiv(nc8, 4), 8), 8)
    tm = min(max_tm, tm_grid, nc8)

    nc_pad = _round_up(nc8, tm)
    grid = (nc_pad // tm,)

    pads = ((0, nc_pad - NC), (0, hw_pad - HW))
    if pads != ((0, 0), (0, 0)):
        x2d = jnp.pad(x2d, pads)  # zero pad: sum unaffected; max masked in-kernel

    # Explicit VMEM budget: 2x input tile (double buffered) + tiny output + slack.
    vmem_limit = 2 * tm * hw_pad * itemsize + 2 * tm * 2 * itemsize + (4 << 20)

    kernel = functools.partial(_maxavg_kernel, hw_true=HW)

    # NOTE: the lane-axis reduction could be restructured into VPU partial
    # reductions + one final XLU reduce if it ever becomes the binding slot on
    # v7x; this kernel is HBM-bound on all current generations, so we keep the
    # straightforward jnp.max / jnp.sum form.
    out = pl.pallas_call(
        kernel,
        out_shape=jax.ShapeDtypeStruct((nc_pad, 2), x.dtype),
        grid_spec=pltpu.PrefetchScalarGridSpec(
            num_scalar_prefetch=0,
            grid=grid,
            in_specs=[pl.BlockSpec((tm, hw_pad), lambda i: (i, 0))],
            out_specs=pl.BlockSpec((tm, 2), lambda i: (i, 0)),
        ),
        compiler_params=pltpu.CompilerParams(
            dimension_semantics=("parallel",),
            vmem_limit_bytes=int(vmem_limit),
        ),
    )(x2d)

    out = out[:NC]
    max_f = out[:, 0].reshape(N, C, 1, 1)
    avg_f = out[:, 1].reshape(N, C, 1, 1)
    return jnp.concatenate((max_f, avg_f), axis=1)


if __name__ == "__main__":
    key = jax.random.PRNGKey(0)
    x = jax.random.normal(key, (2, 4, 16, 16), dtype=jnp.float32)

    out = max_avg_pool2d(x)
    out = jax.block_until_ready(out)

    # Reference check (plain JAX)
    ref_max = jnp.max(x, axis=(2, 3), keepdims=True)
    ref_avg = jnp.mean(x, axis=(2, 3), keepdims=True)
    ref = jnp.concatenate((ref_max, ref_avg), axis=1)

    assert out.shape == (2, 8, 1, 1), out.shape
    assert jnp.allclose(out, ref, atol=1e-5, rtol=1e-5), "mismatch vs reference"
    print("KERNEL_OK")
</pallas_src>

<mosaic_0001>
module attributes {stable_mosaic.version = 11 : i64} {
  func.func @_maxavg_kernel(%arg0: i32, %arg1: memref<8x256xf32, #tpu.memory_space<vmem>>, %arg2: memref<8x2xf32, #tpu.memory_space<vmem>>) attributes {dimension_semantics = [#tpu.dimension_semantics<parallel>], iteration_bounds = array<i64: 1>, scalar_prefetch = 0 : i64, scratch_operands = 0 : i64, tpu.core_type = #tpu.core_type<tc>, window_params = [{transform_indices = @transform_0, window_bounds = array<i64: 8, 256>}, {transform_indices = @transform_1, window_bounds = array<i64: 8, 2>}]} {
    %c0 = arith.constant 0 : index
    %c0_0 = arith.constant 0 : index
    %0 = vector.load %arg1[%c0, %c0_0] : memref<8x256xf32, #tpu.memory_space<vmem>>, vector<8x256xf32>
    %cst = arith.constant dense<0xFF800000> : vector<8xf32>
    %1 = vector.multi_reduction <maximumf>, %0, %cst [1] : vector<8x256xf32> to vector<8xf32>
    %2 = vector.shape_cast %1 : vector<8xf32> to vector<8x1xf32>
    %cst_1 = arith.constant dense<0.000000e+00> : vector<8xf32>
    %3 = vector.multi_reduction <add>, %0, %cst_1 [1] : vector<8x256xf32> to vector<8xf32>
    %4 = vector.shape_cast %3 : vector<8xf32> to vector<8x1xf32>
    %cst_2 = arith.constant 3.906250e-03 : f32
    %5 = vector.broadcast %cst_2 : f32 to vector<8x1xf32>
    %6 = arith.mulf %4, %5 : vector<8x1xf32>
    %7 = tpu.concatenate %2, %6 in 1 : vector<8x1xf32>, vector<8x1xf32> -> vector<8x2xf32>
    %c0_3 = arith.constant 0 : index
    %c0_4 = arith.constant 0 : index
    %8 = vector.load %arg2[%c0_3, %c0_4] : memref<8x2xf32, #tpu.memory_space<vmem>>, vector<8x2xf32>
    tpu.vector_store %arg2[%c0_3, %c0_4], %7 {strides = array<i32>} : memref<8x2xf32, #tpu.memory_space<vmem>>, vector<8x2xf32>,
    return
  }
  func.func @transform_0(%arg0: i32) -> (i32, i32) {
    %c0_i32 = arith.constant 0 : i32
    %c0_i32_0 = arith.constant 0 : i32
    return %arg0, %c0_i32 : i32, i32
  }
  func.func @transform_1(%arg0: i32) -> (i32, i32) {
    %c0_i32 = arith.constant 0 : i32
    %c0_i32_0 = arith.constant 0 : i32
    return %arg0, %c0_i32 : i32, i32
  }
}

</mosaic_0001>

<bundles_post_ra>
// kernel: tpu_custom_call.1
= control target key start
LH: loop header
LB: loop body
LE: loop exit
PB: predicated region body
PF: predicated region fallthrough
CT: control target
= control target key end

     0   :  { %6 = vsyncpa [#allocation3], 0  ;;  %s63_s6 = smov [#allocation2]   ;;  %s89_s0 = inlined_call_operand.hbm [shape: f32[8,256], index: 0, kind: input, shape index: {}]   ;;  %s90_s1 = inlined_call_operand.vmem [shape: f32[8,2], index: 1, kind: output, shape index: {}]  }
   0x1   :  { %s13_s7 = sshll.u32 %s63_s6, 4  ;;  %s39_s10 = scalar_lea.hbm %s89_s0, 256  ;;  %s14_s7 = int_to_ptr.vmem [resolvable:$true] %s13_s7 }
   0x2   :  { %p40_p0 = scmp.ne.s32.totalorder %s89_s0, %s39_s10  ;;  %p43_p1 = scmp.lt.u32.totalorder %s39_s10, %s89_s0 }
   0x4   :  { %p45_p2 = pnand %p43_p1, %p40_p0 }
   0x6   :  { %48 = shalt.err (!%p45_p2)
}
   0x7   :  { %s49_s15 = scalar_lea.vmem %s14_s7, 256  ;;  %p54_p4 = scmp.lt.s32.totalorder %s14_s7, %s14_s7 }
   0x8   :  { %p50_p3 = scmp.ne.s32.totalorder %s14_s7, %s49_s15  ;;  %p55_p5 = scmp.lt.s32.totalorder %s49_s15, %s49_s15 }
   0xa   :  { %p56_p6 = por %p55_p5, %p54_p4 }
   0xc   :  { %p57_p7 = pnand %p56_p6, %p50_p3 }
   0xe   :  { %60 = shalt.err (!%p57_p7)
}
   0xf   :  { %16 = dma.hbm_to_vmem [thread:$0]  %s89_s0, 256, %s14_s7, [#allocation3]  }
  0x10   :  { %61 = dma.done.wait [#allocation3], 256  }
  0x11   :  { %62 = vsyncadd [#allocation3], 4294967040  ;;  %v20_v0 = vld [vmem:[#allocation2] sm:$0xff]  ;;  %v21_v1 = vld [vmem:[#allocation2 + $0x8] sm:$0xff]  ;;  %vm29_vm0 = vcmask 7168   ;;  %vm31_vm1 = vcmask 15360  }
  0x12   :  { %v25_v2 = vadd.f32 %v21_v1, %v20_v0  ;;  %v22_v3 = vmax.f32 %v20_v0, %v21_v1 }
  0x14   :  { %26 = vadd.xlane.f32.xlu0 %v25_v2 }
  0x18   :  { %23 = vmax.xlane.f32.xlu0 %v22_v3 }
  0xa1   :  { %v27_v4 = vpop.xlane.xlu0 %26 }
  0xa2   :  { %v28_v5 = vmul.f32 0.00390625, %v27_v4 }
  0xa5   :  { %v24_v6 = vpop.xlane.xlu0 %23 }
  0xa6   :  { %v30_v7 = vsel %vm29_vm0, %v24_v6, %v28_v5 }
  0xa7   :  { %32 = vst.msk [vmem:[%s90_s1] sm:$0xff] %vm31_vm1, %v30_v7 }
  0xa8   :  { %37 = vsyncpa [#allocation3], 1 }

</bundles_post_ra>
